<compile_context>
chip_gen: v7x
topology: tpu7x:2x2x1
jax: 0.10.0
libtpu: 0.0.40
codegen_flags: <defaults>
</compile_context>

<pallas_src>
import functools

import jax
import jax.numpy as jnp
from jax.experimental import pallas as pl
from jax.experimental.pallas import tpu as pltpu


# --------------------------------------------------------------------------
# Kernel
# --------------------------------------------------------------------------
def _critic_kernel(s_ref, a_ref, g_ref,
                   ws_ref, wa_ref, wg_ref, b14_ref,
                   w2_ref, b2_ref, w5_ref, b5_ref,
                   w3p_ref, w6p_ref, b36_ref,
                   q_ref, *, h0):
    bf16 = jnp.bfloat16
    f32 = jnp.float32

    s = s_ref[...].astype(bf16)
    a = a_ref[...].astype(bf16)
    g = g_ref[...].astype(bf16)

    # Fused layer-1 for both heads: [B, 2*h0]  (concat done via 3 row-sliced
    # matmuls on the pre-split weight, so x never round-trips through HBM).
    h1 = (jnp.dot(s, ws_ref[...], preferred_element_type=f32)
          + jnp.dot(a, wa_ref[...], preferred_element_type=f32)
          + jnp.dot(g, wg_ref[...], preferred_element_type=f32)
          + b14_ref[...])
    h1 = jnp.maximum(h1, 0.0)                       # f32 ReLU (v5e-safe)

    h = h1[:, :h0].astype(bf16)                     # Q1 branch (aligned slice)
    k = h1[:, h0:].astype(bf16)                     # Q2 branch

    # Layer-2 per head (inputs differ, so keep as two matmuls; a block-diag
    # fusion would double the weight DMA bytes).
    h2 = jnp.maximum(
        jnp.dot(h, w2_ref[...], preferred_element_type=f32) + b2_ref[...], 0.0)
    k2 = jnp.maximum(
        jnp.dot(k, w5_ref[...], preferred_element_type=f32) + b5_ref[...], 0.0)

    # Output layers: zero-padded [h1, 2] weights -> single [B, 2] result,
    # one store instead of two N=1 masked stores.
    q = (jnp.dot(h2.astype(bf16), w3p_ref[...], preferred_element_type=f32)
         + jnp.dot(k2.astype(bf16), w6p_ref[...], preferred_element_type=f32)
         + b36_ref[...])
    q_ref[...] = q.astype(q_ref.dtype)


# --------------------------------------------------------------------------
# Parameter init (PyTorch nn.Linear-style) and kernel-layout packing
# --------------------------------------------------------------------------
def init_critic_params(key, state_dim, action_dim, goal_dim,
                       hidden_sizes=(256, 256)):
    """Uniform +-1/sqrt(fan_in) init, weights stored as [in, out], f32."""
    d_in = state_dim + action_dim + goal_dim
    dims = [
        (d_in, hidden_sizes[0]),              # l1
        (hidden_sizes[0], hidden_sizes[1]),   # l2
        (hidden_sizes[1], 1),                 # l3
        (d_in, hidden_sizes[0]),              # l4
        (hidden_sizes[0], hidden_sizes[1]),   # l5
        (hidden_sizes[1], 1),                 # l6
    ]
    params = []
    for (fan_in, fan_out) in dims:
        key, kw, kb = jax.random.split(key, 3)
        bound = 1.0 / jnp.sqrt(jnp.float32(fan_in))
        w = jax.random.uniform(kw, (fan_in, fan_out), jnp.float32, -bound, bound)
        b = jax.random.uniform(kb, (1, fan_out), jnp.float32, -bound, bound)
        params.extend([w, b])
    return tuple(params)


def pack_critic_params(params, state_dim, action_dim, goal_dim):
    """One-time repack into the kernel layout (bf16 weights, fused heads)."""
    (w1, b1, w2, b2, w3, b3, w4, b4, w5, b5, w6, b6) = params
    bf16 = jnp.bfloat16
    f32 = jnp.float32

    # Fused layer-1 weight [d_in, 2*h0], pre-split by input component.
    w14 = jnp.concatenate([w1, w4], axis=1).astype(bf16)
    ws = w14[:state_dim]
    wa = w14[state_dim:state_dim + action_dim]
    wg = w14[state_dim + action_dim:]
    b14 = jnp.concatenate([b1, b4], axis=1).astype(f32)       # [1, 2*h0]

    # Output layers zero-padded to width 2 (q1 -> col 0, q2 -> col 1).
    w3p = jnp.concatenate([w3, jnp.zeros_like(w3)], axis=1).astype(bf16)
    w6p = jnp.concatenate([jnp.zeros_like(w6), w6], axis=1).astype(bf16)
    b36 = jnp.concatenate([b3, b6], axis=1).astype(f32)       # [1, 2]

    return (ws, wa, wg, b14,
            w2.astype(bf16), b2.astype(f32),
            w5.astype(bf16), b5.astype(f32),
            w3p, w6p, b36)


# --------------------------------------------------------------------------
# Forward pass
# --------------------------------------------------------------------------
@jax.jit
def critic_forward(state, action, goal, packed):
    """Returns (q1, q2), each [B, 1] f32 — same semantics as Critic.forward."""
    (ws, wa, wg, b14, w2, b2, w5, b5, w3p, w6p, b36) = packed

    B = state.shape[0]
    d_in = ws.shape[0] + wa.shape[0] + wg.shape[0]
    h0x2 = b14.shape[1]          # 2 * hidden_sizes[0]
    h0 = h0x2 // 2
    h1s = w2.shape[1]            # hidden_sizes[1]

    inputs = (state.astype(jnp.float32),
              action.astype(jnp.float32),
              goal.astype(jnp.float32),
              ws, wa, wg, b14, w2, b2, w5, b5, w3p, w6p, b36)

    vmem = pl.BlockSpec(memory_space=pltpu.MemorySpace.VMEM)

    flops = 2 * B * (d_in * h0x2 + 2 * h0 * h1s + 2 * h1s * 2)
    bytes_accessed = (sum(int(a.size) * a.dtype.itemsize for a in inputs)
                      + B * 2 * 4)

    q = pl.pallas_call(
        functools.partial(_critic_kernel, h0=h0),
        out_shape=jax.ShapeDtypeStruct((B, 2), jnp.float32),
        in_specs=[vmem] * len(inputs),
        out_specs=vmem,
        cost_estimate=pl.CostEstimate(flops=flops, transcendentals=0,
                                      bytes_accessed=bytes_accessed),
    )(*inputs)

    # TODO(synk): on v7x a size-2 "parallel" grid axis over the heads (or
    # batch tiles for large B) could shard work across the two TensorCores.
    return q[:, 0:1], q[:, 1:2]


# --------------------------------------------------------------------------
# References for checking
# --------------------------------------------------------------------------
def _reference_f32(state, action, goal, params):
    x = jnp.concatenate([state, action, goal], axis=1).astype(jnp.float32)
    (w1, b1, w2, b2, w3, b3, w4, b4, w5, b5, w6, b6) = params
    h = jnp.maximum(x @ w1 + b1, 0.0)
    h = jnp.maximum(h @ w2 + b2, 0.0)
    q1 = h @ w3 + b3
    g = jnp.maximum(x @ w4 + b4, 0.0)
    g = jnp.maximum(g @ w5 + b5, 0.0)
    q2 = g @ w6 + b6
    return q1, q2


def _reference_bf16(state, action, goal, packed):
    """Mirrors the kernel's precision: bf16 matmul inputs, f32 accumulate."""
    (ws, wa, wg, b14, w2, b2, w5, b5, w3p, w6p, b36) = packed
    bf16 = jnp.bfloat16
    f32 = jnp.float32
    s = state.astype(bf16); a = action.astype(bf16); g = goal.astype(bf16)
    h1 = (jnp.dot(s, ws, preferred_element_type=f32)
          + jnp.dot(a, wa, preferred_element_type=f32)
          + jnp.dot(g, wg, preferred_element_type=f32) + b14)
    h1 = jnp.maximum(h1, 0.0)
    h0 = b14.shape[1] // 2
    h = h1[:, :h0].astype(bf16)
    k = h1[:, h0:].astype(bf16)
    h2 = jnp.maximum(jnp.dot(h, w2, preferred_element_type=f32) + b2, 0.0)
    k2 = jnp.maximum(jnp.dot(k, w5, preferred_element_type=f32) + b5, 0.0)
    q = (jnp.dot(h2.astype(bf16), w3p, preferred_element_type=f32)
         + jnp.dot(k2.astype(bf16), w6p, preferred_element_type=f32) + b36)
    return q[:, 0:1], q[:, 1:2]


# --------------------------------------------------------------------------
if __name__ == "__main__":
    key = jax.random.PRNGKey(0)
    state_dim, action_dim, goal_dim = 12, 4, 8
    hidden_sizes = (256, 256)
    batch = 8

    kp, ks, ka, kg = jax.random.split(key, 4)
    params = init_critic_params(kp, state_dim, action_dim, goal_dim, hidden_sizes)
    packed = pack_critic_params(params, state_dim, action_dim, goal_dim)

    state = jax.random.normal(ks, (batch, state_dim), jnp.float32)
    action = jax.random.normal(ka, (batch, action_dim), jnp.float32)
    goal = jax.random.normal(kg, (batch, goal_dim), jnp.float32)

    q1, q2 = critic_forward(state, action, goal, packed)
    jax.block_until_ready((q1, q2))
    assert q1.shape == (batch, 1) and q2.shape == (batch, 1)

    # Exact-precision check vs a JAX reference that mirrors the kernel math.
    r1, r2 = _reference_bf16(state, action, goal, packed)
    assert jnp.allclose(q1, r1, atol=1e-3, rtol=1e-3)
    assert jnp.allclose(q2, r2, atol=1e-3, rtol=1e-3)

    # Semantics check vs the full-f32 PyTorch-equivalent reference
    # (looser tolerance: weights are quantized to bf16).
    f1, f2 = _reference_f32(state, action, goal, params)
    assert jnp.allclose(q1, f1, atol=5e-2, rtol=5e-2)
    assert jnp.allclose(q2, f2, atol=5e-2, rtol=5e-2)

    print("KERNEL_OK")
</pallas_src>

<mosaic_0001>
module attributes {stable_mosaic.version = 11 : i64} {
  func.func @_critic_kernel(%arg0: memref<8x12xf32, #tpu.memory_space<vmem>>, %arg1: memref<8x4xf32, #tpu.memory_space<vmem>>, %arg2: memref<8x8xf32, #tpu.memory_space<vmem>>, %arg3: memref<12x512xbf16, #tpu.memory_space<vmem>>, %arg4: memref<4x512xbf16, #tpu.memory_space<vmem>>, %arg5: memref<8x512xbf16, #tpu.memory_space<vmem>>, %arg6: memref<1x512xf32, #tpu.memory_space<vmem>>, %arg7: memref<256x256xbf16, #tpu.memory_space<vmem>>, %arg8: memref<1x256xf32, #tpu.memory_space<vmem>>, %arg9: memref<256x256xbf16, #tpu.memory_space<vmem>>, %arg10: memref<1x256xf32, #tpu.memory_space<vmem>>, %arg11: memref<256x2xbf16, #tpu.memory_space<vmem>>, %arg12: memref<256x2xbf16, #tpu.memory_space<vmem>>, %arg13: memref<1x2xf32, #tpu.memory_space<vmem>>, %arg14: memref<8x2xf32, #tpu.memory_space<vmem>>) attributes {dimension_semantics = [], scalar_prefetch = 0 : i64, scratch_operands = 0 : i64, tpu.core_type = #tpu.core_type<tc>} {
    %c0 = arith.constant 0 : index
    %c0_0 = arith.constant 0 : index
    %0 = vector.load %arg0[%c0, %c0_0] : memref<8x12xf32, #tpu.memory_space<vmem>>, vector<8x12xf32>
    %1 = arith.truncf %0 : vector<8x12xf32> to vector<8x12xbf16>
    %c0_1 = arith.constant 0 : index
    %c0_2 = arith.constant 0 : index
    %2 = vector.load %arg1[%c0_1, %c0_2] : memref<8x4xf32, #tpu.memory_space<vmem>>, vector<8x4xf32>
    %3 = arith.truncf %2 : vector<8x4xf32> to vector<8x4xbf16>
    %c0_3 = arith.constant 0 : index
    %c0_4 = arith.constant 0 : index
    %4 = vector.load %arg2[%c0_3, %c0_4] : memref<8x8xf32, #tpu.memory_space<vmem>>, vector<8x8xf32>
    %5 = arith.truncf %4 : vector<8x8xf32> to vector<8x8xbf16>
    %c0_5 = arith.constant 0 : index
    %c0_6 = arith.constant 0 : index
    %6 = vector.load %arg3[%c0_5, %c0_6] : memref<12x512xbf16, #tpu.memory_space<vmem>>, vector<12x512xbf16>
    %cst = arith.constant dense<0.000000e+00> : vector<8x512xf32>
    %7 = tpu.matmul %1, %6, %cst {dimension_numbers = #tpu.dot_dimension_numbers<[1], [0], [0], [1], [0, 0, 1, 1], [], []>} : vector<8x12xbf16>, vector<12x512xbf16>, vector<8x512xf32> -> vector<8x512xf32>
    %c0_7 = arith.constant 0 : index
    %c0_8 = arith.constant 0 : index
    %8 = vector.load %arg4[%c0_7, %c0_8] : memref<4x512xbf16, #tpu.memory_space<vmem>>, vector<4x512xbf16>
    %cst_9 = arith.constant dense<0.000000e+00> : vector<8x512xf32>
    %9 = tpu.matmul %3, %8, %cst_9 {dimension_numbers = #tpu.dot_dimension_numbers<[1], [0], [0], [1], [0, 0, 1, 1], [], []>} : vector<8x4xbf16>, vector<4x512xbf16>, vector<8x512xf32> -> vector<8x512xf32>
    %10 = arith.addf %7, %9 : vector<8x512xf32>
    %c0_10 = arith.constant 0 : index
    %c0_11 = arith.constant 0 : index
    %11 = vector.load %arg5[%c0_10, %c0_11] : memref<8x512xbf16, #tpu.memory_space<vmem>>, vector<8x512xbf16>
    %cst_12 = arith.constant dense<0.000000e+00> : vector<8x512xf32>
    %12 = tpu.matmul %5, %11, %cst_12 {dimension_numbers = #tpu.dot_dimension_numbers<[1], [0], [0], [1], [0, 0, 1, 1], [], []>} : vector<8x8xbf16>, vector<8x512xbf16>, vector<8x512xf32> -> vector<8x512xf32>
    %13 = arith.addf %10, %12 : vector<8x512xf32>
    %c0_13 = arith.constant 0 : index
    %c0_14 = arith.constant 0 : index
    %14 = vector.load %arg6[%c0_13, %c0_14] : memref<1x512xf32, #tpu.memory_space<vmem>>, vector<1x512xf32>
    %15 = vector.broadcast %14 : vector<1x512xf32> to vector<8x512xf32>
    %16 = arith.addf %13, %15 : vector<8x512xf32>
    %cst_15 = arith.constant 0.000000e+00 : f32
    %17 = vector.broadcast %cst_15 : f32 to vector<8x512xf32>
    %18 = arith.maximumf %16, %17 : vector<8x512xf32>
    %19 = vector.extract_strided_slice %18 {offsets = [0, 0], sizes = [8, 256], strides = [1, 1]} : vector<8x512xf32> to vector<8x256xf32>
    %20 = arith.truncf %19 : vector<8x256xf32> to vector<8x256xbf16>
    %21 = vector.extract_strided_slice %18 {offsets = [0, 256], sizes = [8, 256], strides = [1, 1]} : vector<8x512xf32> to vector<8x256xf32>
    %22 = arith.truncf %21 : vector<8x256xf32> to vector<8x256xbf16>
    %c0_16 = arith.constant 0 : index
    %c0_17 = arith.constant 0 : index
    %23 = vector.load %arg7[%c0_16, %c0_17] : memref<256x256xbf16, #tpu.memory_space<vmem>>, vector<256x256xbf16>
    %cst_18 = arith.constant dense<0.000000e+00> : vector<8x256xf32>
    %24 = tpu.matmul %20, %23, %cst_18 {dimension_numbers = #tpu.dot_dimension_numbers<[1], [0], [0], [1], [0, 0, 1, 1], [], []>} : vector<8x256xbf16>, vector<256x256xbf16>, vector<8x256xf32> -> vector<8x256xf32>
    %c0_19 = arith.constant 0 : index
    %c0_20 = arith.constant 0 : index
    %25 = vector.load %arg8[%c0_19, %c0_20] : memref<1x256xf32, #tpu.memory_space<vmem>>, vector<1x256xf32>
    %26 = vector.broadcast %25 : vector<1x256xf32> to vector<8x256xf32>
    %27 = arith.addf %24, %26 : vector<8x256xf32>
    %cst_21 = arith.constant 0.000000e+00 : f32
    %28 = vector.broadcast %cst_21 : f32 to vector<8x256xf32>
    %29 = arith.maximumf %27, %28 : vector<8x256xf32>
    %c0_22 = arith.constant 0 : index
    %c0_23 = arith.constant 0 : index
    %30 = vector.load %arg9[%c0_22, %c0_23] : memref<256x256xbf16, #tpu.memory_space<vmem>>, vector<256x256xbf16>
    %cst_24 = arith.constant dense<0.000000e+00> : vector<8x256xf32>
    %31 = tpu.matmul %22, %30, %cst_24 {dimension_numbers = #tpu.dot_dimension_numbers<[1], [0], [0], [1], [0, 0, 1, 1], [], []>} : vector<8x256xbf16>, vector<256x256xbf16>, vector<8x256xf32> -> vector<8x256xf32>
    %c0_25 = arith.constant 0 : index
    %c0_26 = arith.constant 0 : index
    %32 = vector.load %arg10[%c0_25, %c0_26] : memref<1x256xf32, #tpu.memory_space<vmem>>, vector<1x256xf32>
    %33 = vector.broadcast %32 : vector<1x256xf32> to vector<8x256xf32>
    %34 = arith.addf %31, %33 : vector<8x256xf32>
    %cst_27 = arith.constant 0.000000e+00 : f32
    %35 = vector.broadcast %cst_27 : f32 to vector<8x256xf32>
    %36 = arith.maximumf %34, %35 : vector<8x256xf32>
    %37 = arith.truncf %29 : vector<8x256xf32> to vector<8x256xbf16>
    %c0_28 = arith.constant 0 : index
    %c0_29 = arith.constant 0 : index
    %38 = vector.load %arg11[%c0_28, %c0_29] : memref<256x2xbf16, #tpu.memory_space<vmem>>, vector<256x2xbf16>
    %cst_30 = arith.constant dense<0.000000e+00> : vector<8x2xf32>
    %39 = tpu.matmul %37, %38, %cst_30 {dimension_numbers = #tpu.dot_dimension_numbers<[1], [0], [0], [1], [0, 0, 1, 1], [], []>} : vector<8x256xbf16>, vector<256x2xbf16>, vector<8x2xf32> -> vector<8x2xf32>
    %40 = arith.truncf %36 : vector<8x256xf32> to vector<8x256xbf16>
    %c0_31 = arith.constant 0 : index
    %c0_32 = arith.constant 0 : index
    %41 = vector.load %arg12[%c0_31, %c0_32] : memref<256x2xbf16, #tpu.memory_space<vmem>>, vector<256x2xbf16>
    %cst_33 = arith.constant dense<0.000000e+00> : vector<8x2xf32>
    %42 = tpu.matmul %40, %41, %cst_33 {dimension_numbers = #tpu.dot_dimension_numbers<[1], [0], [0], [1], [0, 0, 1, 1], [], []>} : vector<8x256xbf16>, vector<256x2xbf16>, vector<8x2xf32> -> vector<8x2xf32>
    %43 = arith.addf %39, %42 : vector<8x2xf32>
    %c0_34 = arith.constant 0 : index
    %c0_35 = arith.constant 0 : index
    %44 = vector.load %arg13[%c0_34, %c0_35] : memref<1x2xf32, #tpu.memory_space<vmem>>, vector<1x2xf32>
    %45 = vector.broadcast %44 : vector<1x2xf32> to vector<8x2xf32>
    %46 = arith.addf %43, %45 : vector<8x2xf32>
    %c0_36 = arith.constant 0 : index
    %c0_37 = arith.constant 0 : index
    %47 = vector.load %arg14[%c0_36, %c0_37] : memref<8x2xf32, #tpu.memory_space<vmem>>, vector<8x2xf32>
    tpu.vector_store %arg14[%c0_36, %c0_37], %46 {strides = array<i32>} : memref<8x2xf32, #tpu.memory_space<vmem>>, vector<8x2xf32>,
    return
  }
}

</mosaic_0001>

<bundles_post_ra>
// kernel: critic_forward.1
= control target key start
LH: loop header
LB: loop body
LE: loop exit
PB: predicated region body
PF: predicated region fallthrough
CT: control target
= control target key end

     0   :  { %19 = vsyncpa [#allocation3], 0  ;;  %s2171_s0 = inlined_call_operand.vmem [shape: f32[8,12], index: 0, kind: input, shape index: {}]   ;;  %s2172_s1 = inlined_call_operand.vmem [shape: f32[8,4], index: 1, kind: input, shape index: {}]   ;;  %s2173_s2 = inlined_call_operand.hbm [shape: f32[8,8], index: 2, kind: input, shape index: {}]   ;;  %s2174_s3 = inlined_call_operand.vmem [shape: bf16[12,512], index: 3, kind: input, shape index: {}]   ;;  %s2175_s4 = inlined_call_operand.hbm [shape: bf16[4,512], index: 4, kind: input, shape index: {}]   ;;  %s2176_s5 = inlined_call_operand.hbm [shape: bf16[8,512], index: 5, kind: input, shape index: {}]   ;;  %s2177_s6 = inlined_call_operand.hbm [shape: f32[1,512], index: 6, kind: input, shape index: {}]   ;;  %s2178_s7 = inlined_call_operand.vmem [shape: bf16[256,256], index: 7, kind: input, shape index: {}]   ;;  %s2179_s8 = inlined_call_operand.vmem [shape: f32[1,256], index: 8, kind: input, shape index: {}]   ;;  %s2180_s9 = inlined_call_operand.hbm [shape: bf16[256,256], index: 9, kind: input, shape index: {}]   ;;  %s2181_s10 = inlined_call_operand.vmem [shape: f32[1,256], index: 10, kind: input, shape index: {}]   ;;  %s2182_s11 = inlined_call_operand.vmem [shape: bf16[256,2], index: 11, kind: input, shape index: {}]   ;;  %s2183_s12 = inlined_call_operand.vmem [shape: bf16[256,2], index: 12, kind: input, shape index: {}]   ;;  %s2184_s13 = inlined_call_operand.vmem [shape: f32[1,2], index: 13, kind: input, shape index: {}]   ;;  %s2185_s14 = inlined_call_operand.vmem [shape: f32[8,2], index: 14, kind: output, shape index: {}]  }
   0x1   :  { %20 = vsyncpa [#allocation5], 0 }
   0x2   :  { %21 = vsyncpa [#allocation8], 0  ;;  %s1776_s29 = smov [#allocation4]   ;;  %s1777_s15 = smov [#allocation7]  }
   0x3   :  { %s44_s30 = sshll.u32 %s1776_s29, 4  ;;  %s64_s16 = sshll.u32 %s1777_s15, 4  ;;  %s45_s30 = int_to_ptr.vmem [resolvable:$true] %s44_s30  ;;  %s65_s16 = int_to_ptr.vmem [resolvable:$true] %s64_s16 }
   0x4   :  { %s1660_s19 = scalar_lea.hbm %s2175_s4, 128 }
   0x5   :  { %p1661_p0 = scmp.ne.s32.totalorder %s2175_s4, %s1660_s19  ;;  %p1664_p1 = scmp.lt.u32.totalorder %s1660_s19, %s2175_s4 }
   0x7   :  { %p1666_p2 = pnand %p1664_p1, %p1661_p0 }
   0x9   :  { %1669 = shalt.err (!%p1666_p2)
}
   0xa   :  { %s1670_s24 = scalar_lea.vmem %s45_s30, 128  ;;  %p1675_p4 = scmp.lt.s32.totalorder %s45_s30, %s45_s30 }
   0xb   :  { %p1671_p3 = scmp.ne.s32.totalorder %s45_s30, %s1670_s24  ;;  %p1676_p5 = scmp.lt.s32.totalorder %s1670_s24, %s1670_s24 }
   0xd   :  { %p1677_p6 = por %p1676_p5, %p1675_p4 }
   0xf   :  { %p1678_p7 = pnand %p1677_p6, %p1671_p3 }
  0x11   :  { %1681 = shalt.err (!%p1678_p7)
}
  0x12   :  { %47 = dma.hbm_to_vmem [thread:$0]  %s2175_s4, 128, %s45_s30, [#allocation5]  }
  0x13   :  { %s1682_s29 = scalar_lea.hbm %s2177_s6, 64 }
  0x14   :  { %p1683_p8 = scmp.ne.s32.totalorder %s2177_s6, %s1682_s29  ;;  %p1686_p9 = scmp.lt.u32.totalorder %s1682_s29, %s2177_s6 }
  0x16   :  { %p1688_p10 = pnand %p1686_p9, %p1683_p8 }
  0x18   :  { %1691 = shalt.err (!%p1688_p10)
}
  0x19   :  { %s1692_s20 = scalar_lea.vmem %s65_s16, 64  ;;  %p1697_p12 = scmp.lt.s32.totalorder %s65_s16, %s65_s16 }
  0x1a   :  { %p1693_p11 = scmp.ne.s32.totalorder %s65_s16, %s1692_s20  ;;  %p1698_p13 = scmp.lt.s32.totalorder %s1692_s20, %s1692_s20 }
  0x1c   :  { %p1699_p0 = por %p1698_p13, %p1697_p12 }
  0x1e   :  { %p1700_p1 = pnand %p1699_p0, %p1693_p11 }
  0x20   :  { %1703 = shalt.err (!%p1700_p1)
}
  0x21   :  { %67 = dma.hbm_to_vmem [thread:$0]  %s2177_s6, 64, %s65_s16, [#allocation8]  }
  0x22   :  { %s1778_s21 = smov [#allocation2]   ;;  %s1779_s23 = smov [#allocation6]  }
  0x23   :  { %s32_s22 = sshll.u32 %s1778_s21, 4  ;;  %s54_s24 = sshll.u32 %s1779_s23, 4  ;;  %s33_s22 = int_to_ptr.vmem [resolvable:$true] %s32_s22  ;;  %s55_s24 = int_to_ptr.vmem [resolvable:$true] %s54_s24 }
  0x24   :  { %s1704_s27 = scalar_lea.hbm %s2173_s2, 128 }
  0x25   :  { %p1705_p2 = scmp.ne.s32.totalorder %s2173_s2, %s1704_s27  ;;  %p1708_p3 = scmp.lt.u32.totalorder %s1704_s27, %s2173_s2 }
  0x27   :  { %p1710_p4 = pnand %p1708_p3, %p1705_p2 }
  0x29   :  { %1713 = shalt.err (!%p1710_p4)
}
  0x2a   :  { %s1714_s6 = scalar_lea.vmem %s33_s22, 128  ;;  %p1719_p6 = scmp.lt.s32.totalorder %s33_s22, %s33_s22 }
  0x2b   :  { %p1715_p5 = scmp.ne.s32.totalorder %s33_s22, %s1714_s6  ;;  %p1720_p7 = scmp.lt.s32.totalorder %s1714_s6, %s1714_s6 }
  0x2d   :  { %p1721_p8 = por %p1720_p7, %p1719_p6 }
  0x2f   :  { %p1722_p9 = pnand %p1721_p8, %p1715_p5 }
  0x31   :  { %1725 = shalt.err (!%p1722_p9)
}
  0x32   :  { %35 = dma.hbm_to_vmem [thread:$0]  %s2173_s2, 128, %s33_s22, [#allocation3]  }
  0x33   :  { %s1726_s4 = scalar_lea.hbm %s2176_s5, 256 }
  0x34   :  { %p1727_p10 = scmp.ne.s32.totalorder %s2176_s5, %s1726_s4  ;;  %p1730_p11 = scmp.lt.u32.totalorder %s1726_s4, %s2176_s5 }
  0x36   :  { %p1732_p12 = pnand %p1730_p11, %p1727_p10 }
  0x38   :  { %1735 = shalt.err (!%p1732_p12)
}
  0x39   :  { %s1736_s26 = scalar_lea.vmem %s55_s24, 256  ;;  %p1741_p0 = scmp.lt.s32.totalorder %s55_s24, %s55_s24 }
  0x3a   :  { %p1737_p13 = scmp.ne.s32.totalorder %s55_s24, %s1736_s26  ;;  %p1742_p1 = scmp.lt.s32.totalorder %s1736_s26, %s1736_s26 }
  0x3c   :  { %p1743_p2 = por %p1742_p1, %p1741_p0 }
  0x3e   :  { %p1744_p3 = pnand %p1743_p2, %p1737_p13 }
  0x40   :  { %1747 = shalt.err (!%p1744_p3)
}
  0x41   :  { %57 = dma.hbm_to_vmem [thread:$0]  %s2176_s5, 256, %s55_s24, [#allocation5]  }
  0x42   :  { %s1780_s27 = smov [#allocation9]   ;;  %s1748_s17 = scalar_lea.hbm %s2180_s9, 4096 }
  0x43   :  { %s77_s28 = sshll.u32 %s1780_s27, 4  ;;  %p1749_p4 = scmp.ne.s32.totalorder %s2180_s9, %s1748_s17  ;;  %s78_s28 = int_to_ptr.vmem [resolvable:$true] %s77_s28 }
  0x44   :  { %p1752_p5 = scmp.lt.u32.totalorder %s1748_s17, %s2180_s9 }
  0x46   :  { %p1754_p6 = pnand %p1752_p5, %p1749_p4 }
  0x48   :  { %1757 = shalt.err (!%p1754_p6)
}
  0x49   :  { %s1758_s20 = scalar_lea.vmem %s78_s28, 4096  ;;  %p1763_p8 = scmp.lt.s32.totalorder %s78_s28, %s78_s28 }
  0x4a   :  { %p1759_p7 = scmp.ne.s32.totalorder %s78_s28, %s1758_s20  ;;  %p1764_p9 = scmp.lt.s32.totalorder %s1758_s20, %s1758_s20 }
  0x4c   :  { %p1765_p10 = por %p1764_p9, %p1763_p8 }
  0x4e   :  { %p1766_p11 = pnand %p1765_p10, %p1759_p7 }
  0x50   :  { %1769 = shalt.err (!%p1766_p11)
}
  0x51   :  { %s1781_s5 = smov 128   ;;  %s1782_s24 = smov 8  }
  0x52   :  { %83 = dma.hbm_to_vmem [thread:$0]  %s2180_s9, 4096, %s78_s28, [#allocation8], %s1781_s5, %s1781_s5, %s1782_s24  }
  0x53   :  { %1770 = dma.done.wait [#allocation3], 128  }
  0x54   :  { %1771 = vsyncadd [#allocation3], 4294967168 }
  0x55   :  { %1772 = dma.done.wait [#allocation5], 384  }
  0x56   :  { %1773 = vsyncadd [#allocation5], 4294966912 }
  0x57   :  { %1774 = dma.done.wait [#allocation8], 4160  }
  0x58   :  { %1775 = vsyncadd [#allocation8], 4294963136  ;;  %v124_v0 = vlaneseq  ;;  %v1783_v1 = vmov 1983009808   ;;  %v1784_v3 = vmov 0   ;;  %v118_v7 = vld [vmem:[#allocation4] sm:$0xff] }
  0x59   :  { %v122_v2 = vunpack.c.l.s4 %v1783_v1  ;;  %186 = vmatprep.mubr.bf16.mxu0 %v1784_v3  ;;  %227 = vmatprep.mubr.bf16.mxu1 %v1784_v3  ;;  %vm141_vm0 = vcmask 1041408   ;;  %v120_v9 = vcombine.high %v118_v7, %v118_v7  ;;  %v110_v10 = vld [vmem:[%s2172_s1] sm:$0xff]  ;;  %vm256_vm1 = vcmask 1045504   ;;  %v1524_v16 = vld [vmem:[%s2174_s3 + $0xc] ss:$16 sps:$4 sm:$0x3f]  }
  0x5a   :  { %v1920_v4 = vshrl.u32 %v124_v0, 7  ;;  %v1522_v11 = vld [vmem:[%s2174_s3 + $0x4] ss:$16 sps:$4 sm:$0x3f]   ;;  %v111_v20 = vpack.c.bf16 %v110_v10, %v110_v10  ;;  %vm137_vm2 = vcmask 31744   ;;  %v352_v22 = vld [vmem:[#allocation6 + $0x8] sm:$0xff] }
  0x5b   :  { %v123_v5 = vunpack.c.0.s8 %v122_v2  ;;  %v1526_v15 = vld [vmem:[%s2174_s3] ss:$16 sps:$4 sm:$0x3f]   ;;  %v1527_v21 = vld [vmem:[%s2174_s3 + $0x8] ss:$16 sps:$4 sm:$0x3f]   ;;  %v1366_v26 = vcombine.high %v352_v22, %v352_v22  ;;  %v1365_v30 = vcombine.low %v352_v22, %v352_v22 }
  0x5c   :  { %v351_v17 = vld [vmem:[#allocation6] sm:$0xff]  ;;  %v258_v23 = vsel %vm256_vm1, %v1526_v15, 0  ;;  %vm367_vm3 = vcmask 1043456   ;;  %v264_v25 = vsel %vm256_vm1, %v1527_v21, 0  ;;  %v108_v27 = vld [vmem:[%s2171_s0] sm:$0xff]  ;;  %vm252_vm4 = vcmask 97280  }
  0x5d   :  { %v126_v6 = vsub.s32 %v123_v5, %v1920_v4  ;;  %v1364_v24 = vcombine.high %v351_v17, %v351_v17  ;;  %v1363_v28 = vcombine.low %v351_v17, %v351_v17  ;;  %v109_v29 = vpack.c.bf16 %v108_v27, %v108_v27  ;;  %v1534_v32 = vld [vmem:[%s2178_s7 + $0x4] ss:$8 sps:$4 sm:$0xff]   ;;  %v1537_v34 = vld [vmem:[#allocation9 + $0x4] ss:$8 sps:$4 sm:$0xff]   ;;  %v1540_v38 = vld [vmem:[%s2178_s7 + $0x14] ss:$8 sps:$4 sm:$0xff]  }
  0x5e   :  { %v375_v33 = vsel %vm367_vm3, %v1365_v30, 0  ;;  %v112_v35 = vld [vmem:[#allocation2] sm:$0xff]  ;;  %vm363_vm5 = vcmask 64512   ;;  %v1538_v41 = vld [vmem:[%s2178_s7 + $0x10] ss:$8 sps:$4 sm:$0xff]   ;;  %vm1342_vm6 = vcmask 15360  }
  0x5f   :  { %v127_v8 = vrot.slane %v118_v7, %v126_v6  ;;  %v134_v14 = vrot.slane %v120_v9, %v126_v6  ;;  %v369_v31 = vsel %vm367_vm3, %v1363_v28, 0  ;;  %v113_v36 = vpack.c.bf16 %v112_v35, %v112_v35  ;;  %v1532_v37 = vld [vmem:[%s2178_s7] ss:$8 sps:$4 sm:$0xff]   ;;  %v1535_v39 = vld [vmem:[#allocation9] ss:$8 sps:$4 sm:$0xff]  }
  0x60   :  { %v1543_v40 = vld [vmem:[#allocation9 + $0x14] ss:$8 sps:$4 sm:$0xff]   ;;  %v1546_v42 = vld [vmem:[%s2178_s7 + $0x24] ss:$8 sps:$4 sm:$0xff]   ;;  %v1541_v43 = vld [vmem:[#allocation9 + $0x10] ss:$8 sps:$4 sm:$0xff]  }
  0x61   :  { %v135_v12 = vcombine.high %v127_v8, %v127_v8  ;;  %v143_v13 = vsel %vm141_vm0, %v127_v8, 0  ;;  %v136_v18 = vcombine.high %v134_v14, %v134_v14  ;;  %v149_v19 = vsel %vm141_vm0, %v134_v14, 0  ;;  %v1544_v44 = vld [vmem:[%s2178_s7 + $0x20] ss:$8 sps:$4 sm:$0xff]   ;;  %v1547_v46 = vld [vmem:[#allocation9 + $0x20] ss:$8 sps:$4 sm:$0xff]  }
  0x62   :  { %v1549_v45 = vld [vmem:[#allocation9 + $0x24] ss:$8 sps:$4 sm:$0xff]   ;;  %v1552_v47 = vld [vmem:[%s2178_s7 + $0x34] ss:$8 sps:$4 sm:$0xff]   ;;  %v1555_v48 = vld [vmem:[#allocation9 + $0x34] ss:$8 sps:$4 sm:$0xff]  }
  0x63   :  { %1351 = vmatprep.subr.msk.bf16.mxu0 %vm141_vm0, %v135_v12  ;;  %1353 = vmatprep.subr.msk.bf16.mxu1 %vm141_vm0, %v136_v18  ;;  %v1550_v49 = vld [vmem:[%s2178_s7 + $0x30] ss:$8 sps:$4 sm:$0xff]   ;;  %v1558_v50 = vld [vmem:[%s2178_s7 + $0x44] ss:$8 sps:$4 sm:$0xff]   ;;  %v1553_v51 = vld [vmem:[#allocation9 + $0x30] ss:$8 sps:$4 sm:$0xff]  }
  0x64   :  { %155 = vmatpush1.bf16.msra.mxu0 %v143_v13  ;;  %196 = vmatpush1.bf16.msra.mxu1 %v149_v19  ;;  %v1561_v52 = vld [vmem:[#allocation9 + $0x44] ss:$8 sps:$4 sm:$0xff]   ;;  %v1564_v54 = vld [vmem:[%s2178_s7 + $0x54] ss:$8 sps:$4 sm:$0xff]   ;;  %v1559_v55 = vld [vmem:[#allocation9 + $0x40] ss:$8 sps:$4 sm:$0xff]  }
  0x65   :  { %1359 = vmatprep.subr.msk.bf16.mxu0 %vm256_vm1, %v1522_v11  ;;  %1361 = vmatprep.subr.msk.bf16.mxu1 %vm256_vm1, %v1524_v16  ;;  %v1556_v53 = vld [vmem:[%s2178_s7 + $0x40] ss:$8 sps:$4 sm:$0xff]   ;;  %v1562_v57 = vld [vmem:[%s2178_s7 + $0x50] ss:$8 sps:$4 sm:$0xff]   ;;  %v1570_v58 = vld [vmem:[%s2178_s7 + $0x64] ss:$8 sps:$4 sm:$0xff]  }
  0x66   :  { %v1567_v56 = vld [vmem:[#allocation9 + $0x54] ss:$8 sps:$4 sm:$0xff]   ;;  %v1565_v59 = vld [vmem:[#allocation9 + $0x50] ss:$8 sps:$4 sm:$0xff]   ;;  %v1573_v60 = vld [vmem:[#allocation9 + $0x64] ss:$8 sps:$4 sm:$0xff]  }
  0x67   :  { %1352 = vmatmul.mubr.msk.bf16.vlgmr.msra.gmra.mrb[0].mxu0 %vm137_vm2, %v111_v20  ;;  %1354 = vmatmul.mubr.msk.bf16.vlgmr.msra.gmra.mrb[0].mxu1 %vm137_vm2, %v111_v20  ;;  %v1568_v61 = vld [vmem:[%s2178_s7 + $0x60] ss:$8 sps:$4 sm:$0xff]   ;;  %v1576_v62 = vld [vmem:[%s2178_s7 + $0x74] ss:$8 sps:$4 sm:$0xff]   ;;  %v1571_v63 = vld [vmem:[#allocation9 + $0x60] ss:$8 sps:$4 sm:$0xff]  }
  0x68   :  { %270 = vmatpush1.bf16.msra.mxu0 %v258_v23  ;;  %301 = vmatprep.mubr.bf16.mxu0 %v1784_v3  ;;  %v1579_v0 = vld [vmem:[#allocation9 + $0x74] ss:$8 sps:$4 sm:$0xff]   ;;  %v1582_v2 = vld [vmem:[%s2178_s7 + $0x84] ss:$8 sps:$4 sm:$0xff]   ;;  %v1585_v5 = vld [vmem:[#allocation9 + $0x84] ss:$8 sps:$4 sm:$0xff]  }
  0x69   :  { %1367 = vmatprep.subr.msk.bf16.mxu0 %vm367_vm3, %v1364_v24  ;;  %311 = vmatpush1.bf16.msra.mxu1 %v264_v25  ;;  %v1574_v1 = vld [vmem:[%s2178_s7 + $0x70] ss:$8 sps:$4 sm:$0xff]   ;;  %v1580_v6 = vld [vmem:[%s2178_s7 + $0x80] ss:$8 sps:$4 sm:$0xff]   ;;  %v1588_v7 = vld [vmem:[%s2178_s7 + $0x94] ss:$8 sps:$4 sm:$0xff]  }
  0x6a   :  { %342 = vmatprep.mubr.bf16.mxu1 %v1784_v3  ;;  %1369 = vmatprep.subr.msk.bf16.mxu1 %vm367_vm3, %v1366_v26  ;;  %v1583_v8 = vld [vmem:[#allocation9 + $0x80] ss:$8 sps:$4 sm:$0xff]   ;;  %v1586_v9 = vld [vmem:[%s2178_s7 + $0x90] ss:$8 sps:$4 sm:$0xff]   ;;  %v1589_v11 = vld [vmem:[#allocation9 + $0x90] ss:$8 sps:$4 sm:$0xff]  }
  0x6b   :  { %v1591_v10 = vld [vmem:[#allocation9 + $0x94] ss:$8 sps:$4 sm:$0xff]   ;;  %v1594_v12 = vld [vmem:[%s2178_s7 + $0xa4] ss:$8 sps:$4 sm:$0xff]   ;;  %v1597_v14 = vld [vmem:[#allocation9 + $0xa4] ss:$8 sps:$4 sm:$0xff]  }
  0x6c   :  { %v1592_v13 = vld [vmem:[%s2178_s7 + $0xa0] ss:$8 sps:$4 sm:$0xff]   ;;  %v1595_v15 = vld [vmem:[#allocation9 + $0xa0] ss:$8 sps:$4 sm:$0xff]   ;;  %v1598_v16 = vld [vmem:[%s2178_s7 + $0xb0] ss:$8 sps:$4 sm:$0xff]  }
  0x6d   :  { %v1600_v17 = vld [vmem:[%s2178_s7 + $0xb4] ss:$8 sps:$4 sm:$0xff]   ;;  %v1603_v18 = vld [vmem:[#allocation9 + $0xb4] ss:$8 sps:$4 sm:$0xff]   ;;  %v1606_v20 = vld [vmem:[%s2178_s7 + $0xc4] ss:$8 sps:$4 sm:$0xff]  }
  0x6e   :  { %v1601_v19 = vld [vmem:[#allocation9 + $0xb0] ss:$8 sps:$4 sm:$0xff]   ;;  %v1604_v21 = vld [vmem:[%s2178_s7 + $0xc0] ss:$8 sps:$4 sm:$0xff]   ;;  %v1607_v23 = vld [vmem:[#allocation9 + $0xc0] ss:$8 sps:$4 sm:$0xff]  }
  0x6f   :  { %1360 = vmatmul.mubr.msk.bf16.vlgmr.msra.gmra.mrb[4].mxu0 %vm252_vm4, %v109_v29  ;;  %1362 = vmatmul.mubr.msk.bf16.vlgmr.msra.gmra.mrb[4].mxu1 %vm252_vm4, %v109_v29  ;;  %v1609_v22 = vld [vmem:[#allocation9 + $0xc4] ss:$8 sps:$4 sm:$0xff]   ;;  %v1612_v25 = vld [vmem:[%s2178_s7 + $0xd4] ss:$8 sps:$4 sm:$0xff]   ;;  %v1615_v26 = vld [vmem:[#allocation9 + $0xd4] ss:$8 sps:$4 sm:$0xff]  }
  0x70   :  { %381 = vmatpush1.bf16.msra.mxu0 %v369_v31  ;;  %412 = vmatprep.mubr.bf16.mxu0 %v1784_v3  ;;  %v1610_v24 = vld [vmem:[%s2178_s7 + $0xd0] ss:$8 sps:$4 sm:$0xff]   ;;  %v1613_v27 = vld [vmem:[#allocation9 + $0xd0] ss:$8 sps:$4 sm:$0xff]   ;;  %v1618_v28 = vld [vmem:[%s2178_s7 + $0xe4] ss:$8 sps:$4 sm:$0xff]  }
  0x71   :  { %704 = vmatprep.subr.bf16.mxu0 %v1534_v32  ;;  %422 = vmatpush1.bf16.msra.mxu1 %v375_v33  ;;  %v1616_v29 = vld [vmem:[%s2178_s7 + $0xe0] ss:$8 sps:$4 sm:$0xff]   ;;  %v1619_v31 = vld [vmem:[#allocation9 + $0xe0] ss:$8 sps:$4 sm:$0xff]   ;;  %v1624_v32 = vld [vmem:[%s2178_s7 + $0xf4] ss:$8 sps:$4 sm:$0xff]  }
  0x72   :  { %453 = vmatprep.mubr.bf16.mxu1 %v1784_v3  ;;  %951 = vmatprep.subr.bf16.mxu1 %v1537_v34  ;;  %v1577_v3 = vld [vmem:[#allocation9 + $0x70] ss:$8 sps:$4 sm:$0xff]   ;;  %v1621_v30 = vld [vmem:[#allocation9 + $0xe4] ss:$8 sps:$4 sm:$0xff]   ;;  %v1627_v34 = vld [vmem:[#allocation9 + $0xf4] ss:$8 sps:$4 sm:$0xff]  }
  0x73   :  { %v1622_v33 = vld [vmem:[%s2178_s7 + $0xf0] ss:$8 sps:$4 sm:$0xff]   ;;  %v1625_v35 = vld [vmem:[#allocation9 + $0xf0] ss:$8 sps:$4 sm:$0xff]  }
  0x77   :  { %1368 = vmatmul.mubr.msk.bf16.vlgmr.msra.gmra.mrb[8].mxu0 %vm363_vm5, %v113_v36  ;;  %1370 = vmatmul.mubr.msk.bf16.vlgmr.msra.gmra.mrb[8].mxu1 %vm363_vm5, %v113_v36  ;;  %v1628_v36 = vld [vmem:[%s2182_s11 + $0x40] sm:$0xff]  }
  0x78   :  { %705 = vmatpush1.bf16.msra.mxu0 %v1532_v37  ;;  %952 = vmatpush1.bf16.msra.mxu1 %v1535_v39  ;;  %v1630_v37 = vld [vmem:[%s2183_s12 + $0x40] sm:$0xff]  }
  0x79   :  { %706 = vmatprep.subr.bf16.mxu0 %v1540_v38  ;;  %953 = vmatprep.subr.bf16.mxu1 %v1543_v40 }
  0x7c   :  { %707 = vmatpush1.bf16.msra.mxu0 %v1538_v41  ;;  %954 = vmatpush1.bf16.msra.mxu1 %v1541_v43 }
  0x7d   :  { %708 = vmatprep.subr.bf16.mxu0 %v1546_v42  ;;  %955 = vmatprep.subr.bf16.mxu1 %v1549_v45 }
  0x80   :  { %709 = vmatpush1.bf16.msra.mxu0 %v1544_v44  ;;  %956 = vmatpush1.bf16.msra.mxu1 %v1547_v46 }
  0x81   :  { %710 = vmatprep.subr.bf16.mxu0 %v1552_v47  ;;  %957 = vmatprep.subr.bf16.mxu1 %v1555_v48 }
  0x84   :  { %711 = vmatpush1.bf16.msra.mxu0 %v1550_v49  ;;  %958 = vmatpush1.bf16.msra.mxu1 %v1553_v51 }
  0x85   :  { %712 = vmatprep.subr.bf16.mxu0 %v1558_v50  ;;  %959 = vmatprep.subr.bf16.mxu1 %v1561_v52 }
  0x88   :  { %713 = vmatpush1.bf16.msra.mxu0 %v1556_v53  ;;  %960 = vmatpush1.bf16.msra.mxu1 %v1559_v55  ;;  %v2056_v55 = vsub.s32 0, %v1920_v4 }
  0x89   :  { %714 = vmatprep.subr.bf16.mxu0 %v1564_v54  ;;  %961 = vmatprep.subr.bf16.mxu1 %v1567_v56 }
  0x8c   :  { %715 = vmatpush1.bf16.msra.mxu0 %v1562_v57  ;;  %962 = vmatpush1.bf16.msra.mxu1 %v1565_v59  ;;  %v2059_v59 = vsub.s32 1, %v1920_v4 }
  0x8d   :  { %716 = vmatprep.subr.bf16.mxu0 %v1570_v58  ;;  %963 = vmatprep.subr.bf16.mxu1 %v1573_v60  ;;  %v466_v58 = vld [vmem:[#allocation7] sm:$0xf] }
  0x90   :  { %717 = vmatpush1.bf16.msra.mxu0 %v1568_v61  ;;  %964 = vmatpush1.bf16.msra.mxu1 %v1571_v63  ;;  %v478_v61 = vsub.s32 2, %v1920_v4  ;;  %v471_v63 = vrot.slane %v466_v58, %v2056_v55 }
  0x91   :  { %718 = vmatprep.subr.bf16.mxu0 %v1576_v62  ;;  %965 = vmatprep.subr.bf16.mxu1 %v1579_v0  ;;  %v482_v62 = vsub.s32 3, %v1920_v4 }
  0x94   :  { %719 = vmatpush1.bf16.msra.mxu0 %v1574_v1  ;;  %966 = vmatpush1.bf16.msra.mxu1 %v1577_v3  ;;  %v475_v1 = vrot.slane %v466_v58, %v2059_v59 }
  0x95   :  { %720 = vmatprep.subr.bf16.mxu0 %v1582_v2  ;;  %967 = vmatprep.subr.bf16.mxu1 %v1585_v5  ;;  %v479_v5 = vrot.slane %v466_v58, %v478_v61 }
  0x98   :  { %721 = vmatpush1.bf16.msra.mxu0 %v1580_v6  ;;  %968 = vmatpush1.bf16.msra.mxu1 %v1583_v8 }
  0x99   :  { %722 = vmatprep.subr.bf16.mxu0 %v1588_v7  ;;  %969 = vmatprep.subr.bf16.mxu1 %v1591_v10 }
  0x9c   :  { %723 = vmatpush1.bf16.msra.mxu0 %v1586_v9  ;;  %970 = vmatpush1.bf16.msra.mxu1 %v1589_v11  ;;  %v483_v9 = vrot.slane %v466_v58, %v482_v62  ;;  %v532_v58 = vld [vmem:[%s2179_s8] sm:$0x3] }
  0x9d   :  { %724 = vmatprep.subr.bf16.mxu0 %v1594_v12  ;;  %971 = vmatprep.subr.bf16.mxu1 %v1597_v14  ;;  %v537_v61 = vrot.slane %v532_v58, %v2056_v55  ;;  %v541_v62 = vrot.slane %v532_v58, %v2059_v59 }
  0xa0   :  { %725 = vmatpush1.bf16.msra.mxu0 %v1592_v13  ;;  %972 = vmatpush1.bf16.msra.mxu1 %v1595_v15 }
  0xa1   :  { %726 = vmatprep.subr.bf16.mxu0 %v1600_v17  ;;  %973 = vmatprep.subr.bf16.mxu1 %v1603_v18 }
  0xa4   :  { %727 = vmatpush1.bf16.msra.mxu0 %v1598_v16  ;;  %974 = vmatpush1.bf16.msra.mxu1 %v1601_v19 }
  0xa5   :  { %728 = vmatprep.subr.bf16.mxu0 %v1606_v20  ;;  %975 = vmatprep.subr.bf16.mxu1 %v1609_v22 }
  0xa8   :  { %729 = vmatpush1.bf16.msra.mxu0 %v1604_v21  ;;  %976 = vmatpush1.bf16.msra.mxu1 %v1607_v23 }
  0xa9   :  { %730 = vmatprep.subr.bf16.mxu0 %v1612_v25  ;;  %977 = vmatprep.subr.bf16.mxu1 %v1615_v26  ;;  %v1634_v26 = vld [vmem:[%s2183_s12 + $0x48] sm:$0xff]  }
  0xac   :  { %731 = vmatpush1.bf16.msra.mxu0 %v1610_v24  ;;  %978 = vmatpush1.bf16.msra.mxu1 %v1613_v27  ;;  %v1631_v24 = vld [vmem:[%s2183_s12] sm:$0xff]  }
  0xad   :  { %732 = vmatprep.subr.bf16.mxu0 %v1618_v28  ;;  %979 = vmatprep.subr.bf16.mxu1 %v1621_v30  ;;  %v1629_v28 = vld [vmem:[%s2182_s11] sm:$0xff]   ;;  %v1632_v30 = vld [vmem:[%s2182_s11 + $0x48] sm:$0xff]  }
  0xb0   :  { %733 = vmatpush1.bf16.msra.mxu0 %v1616_v29  ;;  %980 = vmatpush1.bf16.msra.mxu1 %v1619_v31  ;;  %v1635_v31 = vld [vmem:[%s2183_s12 + $0x8] sm:$0xff]  }
  0xb1   :  { %734 = vmatprep.subr.bf16.mxu0 %v1624_v32  ;;  %981 = vmatprep.subr.bf16.mxu1 %v1627_v34  ;;  %v1638_v32 = vld [vmem:[%s2183_s12 + $0x50] sm:$0xff]  }
  0xb2   :  { %v1636_v34 = vld [vmem:[%s2182_s11 + $0x50] sm:$0xff]  }
  0xb4   :  { %735 = vmatpush1.bf16.msra.mxu0 %v1622_v33  ;;  %982 = vmatpush1.bf16.msra.mxu1 %v1625_v35  ;;  %v1633_v33 = vld [vmem:[%s2182_s11 + $0x8] sm:$0xff]   ;;  %v1639_v35 = vld [vmem:[%s2183_s12 + $0x10] sm:$0xff]  }
  0xb5   :  { %1490 = vmatprep.subr.bf16.mxu1 %v1628_v36  ;;  %1468 = vmatprep.subr.bf16.mxu0 %v1630_v37  ;;  %v1642_v36 = vld [vmem:[%s2183_s12 + $0x58] sm:$0xff]   ;;  %v1637_v37 = vld [vmem:[%s2182_s11 + $0x10] sm:$0xff]  }
 0x13a   :  { %v188_v38 = vpop.f32.mrb[0].mxu0  ;;  %v229_v41 = vpop.f32.mrb[0].mxu1 }
 0x13b   :  { %v190_v39 = vpop.f32.mrb[1].mxu0  ;;  %v231_v43 = vpop.f32.mrb[1].mxu1 }
 0x13c   :  { %v192_v40 = vpop.f32.mrb[2].mxu0  ;;  %v233_v44 = vpop.f32.mrb[2].mxu1 }
 0x13d   :  { %v193_v42 = vpop.f32.mrb[3].mxu0  ;;  %v234_v45 = vpop.f32.mrb[3].mxu1  ;;  %v1646_v40 = vld [vmem:[%s2183_s12 + $0x60] sm:$0xff]   ;;  %v1650_v44 = vld [vmem:[%s2183_s12 + $0x68] sm:$0xff]  }
 0x13e   :  { %v1644_v42 = vld [vmem:[%s2182_s11 + $0x60] sm:$0xff]  }
 0x13f   :  { %v1645_v45 = vld [vmem:[%s2182_s11 + $0x20] sm:$0xff]  }
 0x142   :  { %v303_v46 = vpop.f32.mrb[4].mxu0  ;;  %v344_v51 = vpop.f32.mrb[4].mxu1 }
 0x143   :  { %v304_v47 = vadd.f32 %v303_v46, %v188_v38  ;;  %v305_v48 = vpop.f32.mrb[5].mxu0  ;;  %v345_v52 = vadd.f32 %v344_v51, %v229_v41  ;;  %v346_v54 = vpop.f32.mrb[5].mxu1  ;;  %v1640_v38 = vld [vmem:[%s2182_s11 + $0x58] sm:$0xff]   ;;  %v1648_v46 = vld [vmem:[%s2182_s11 + $0x68] sm:$0xff]   ;;  %v1654_v51 = vld [vmem:[%s2183_s12 + $0x70] sm:$0xff]  }
 0x144   :  { %v306_v49 = vadd.f32 %v305_v48, %v190_v39  ;;  %v307_v50 = vpop.f32.mrb[6].mxu0  ;;  %v347_v56 = vadd.f32 %v346_v54, %v231_v43  ;;  %v348_v57 = vpop.f32.mrb[6].mxu1  ;;  %v1643_v39 = vld [vmem:[%s2183_s12 + $0x18] sm:$0xff]   ;;  %v1647_v43 = vld [vmem:[%s2183_s12 + $0x20] sm:$0xff]   ;;  %v1651_v48 = vld [vmem:[%s2183_s12 + $0x28] sm:$0xff]  }
 0x145   :  { %v308_v53 = vpop.f32.mrb[7].mxu0  ;;  %v349_v60 = vpop.f32.mrb[7].mxu1  ;;  %v1641_v41 = vld [vmem:[%s2182_s11 + $0x18] sm:$0xff]   ;;  %v1653_v50 = vld [vmem:[%s2182_s11 + $0x30] sm:$0xff]  }
 0x146   :  { %v1656_v53 = vld [vmem:[%s2182_s11 + $0x78] sm:$0xff]   ;;  %v779_v60 = vld [vmem:[%s2181_s10] sm:$0x3] }
 0x147   :  { %v1657_v54 = vld [vmem:[%s2182_s11 + $0x38] sm:$0xff]  }
 0x148   :  { %v1659_v57 = vld [vmem:[%s2183_s12 + $0x38] sm:$0xff]  }
 0x14a   :  { %v414_v0 = vpop.f32.mrb[8].mxu0  ;;  %v455_v8 = vpop.f32.mrb[8].mxu1 }
 0x14b   :  { %v462_v2 = vadd.f32 %v414_v0, %v304_v47  ;;  %v416_v3 = vpop.f32.mrb[9].mxu0  ;;  %v464_v11 = vadd.f32 %v455_v8, %v345_v52  ;;  %v457_v13 = vpop.f32.mrb[9].mxu1  ;;  %v1649_v47 = vld [vmem:[%s2182_s11 + $0x28] sm:$0xff]   ;;  %v1655_v52 = vld [vmem:[%s2183_s12 + $0x30] sm:$0xff]  }
 0x14c   :  { %v463_v6 = vadd.f32 %v416_v3, %v306_v49  ;;  %v418_v7 = vpop.f32.mrb[10].mxu0  ;;  %v465_v15 = vadd.f32 %v457_v13, %v347_v56  ;;  %v459_v16 = vpop.f32.mrb[10].mxu1  ;;  %v1652_v49 = vld [vmem:[%s2182_s11 + $0x70] sm:$0xff]   ;;  %v1658_v56 = vld [vmem:[%s2183_s12 + $0x78] sm:$0xff]  }
 0x14d   :  { %v488_v10 = vadd.f32 %v471_v63, %v462_v2  ;;  %v419_v12 = vpop.f32.mrb[11].mxu0  ;;  %v490_v17 = vadd.f32 %v479_v5, %v464_v11  ;;  %v460_v18 = vpop.f32.mrb[11].mxu1  ;;  %v784_v63 = vrot.slane %v779_v60, %v2056_v55 }
 0x14e   :  { %v489_v14 = vadd.f32 %v475_v1, %v463_v6  ;;  %v491_v20 = vadd.f32 %v483_v9, %v465_v15  ;;  %v788_v1 = vrot.slane %v779_v60, %v2059_v59 }
 0x14f   :  { %v492_v4 = vmax.f32 %v488_v10, 0.0  ;;  %v494_v21 = vmax.f32 %v490_v17, 0.0 }
 0x150   :  { %v493_v19 = vmax.f32 %v489_v14, 0.0  ;;  %v495_v23 = vmax.f32 %v491_v20, 0.0 }
 0x151   :  { %v496_v25 = vpack.c.bf16 %v492_v4, %v492_v4  ;;  %v498_v29 = vpack.c.bf16 %v494_v21, %v494_v21 }
 0x152   :  { %v497_v22 = vpack.c.bf16 %v493_v19, %v493_v19  ;;  %v499_v27 = vpack.c.bf16 %v495_v23, %v495_v23 }
 0x154   :  { %736 = vmatprep.mubr.bf16.mxu0 %v497_v22  ;;  %983 = vmatprep.mubr.bf16.mxu1 %v499_v27 }
 0x155   :  { %737 = vmatmul.mubr.bf16.vlgmr.msra.gmra.mrb[12].mxu0 %v496_v25  ;;  %984 = vmatmul.mubr.bf16.vlgmr.msra.gmra.mrb[12].mxu1 %v498_v29 }
 0x156   :  { %1469 = vmatpush3.bf16.msra.mxu0 %v1631_v24  ;;  %1491 = vmatpush3.bf16.msra.mxu1 %v1629_v28  ;;  %v1467_v28 = vld [vmem:[%s2184_s13] ss:$0 sm:$0xff] }
 0x157   :  { %1470 = vmatprep.subr.bf16.mxu0 %v1634_v26  ;;  %1492 = vmatprep.subr.bf16.mxu1 %v1632_v30 }
 0x15a   :  { %1471 = vmatpush3.bf16.msra.mxu0 %v1635_v31  ;;  %1493 = vmatpush3.bf16.msra.mxu1 %v1633_v33 }
 0x15b   :  { %1472 = vmatprep.subr.bf16.mxu0 %v1638_v32  ;;  %1494 = vmatprep.subr.bf16.mxu1 %v1636_v34 }
 0x15e   :  { %1473 = vmatpush3.bf16.msra.mxu0 %v1639_v35  ;;  %1495 = vmatpush3.bf16.msra.mxu1 %v1637_v37 }
 0x15f   :  { %1474 = vmatprep.subr.bf16.mxu0 %v1642_v36  ;;  %1496 = vmatprep.subr.bf16.mxu1 %v1640_v38 }
 0x162   :  { %1475 = vmatpush3.bf16.msra.mxu0 %v1643_v39  ;;  %1497 = vmatpush3.bf16.msra.mxu1 %v1641_v41 }
 0x163   :  { %1476 = vmatprep.subr.bf16.mxu0 %v1646_v40  ;;  %1498 = vmatprep.subr.bf16.mxu1 %v1644_v42 }
 0x166   :  { %1477 = vmatpush3.bf16.msra.mxu0 %v1647_v43  ;;  %1499 = vmatpush3.bf16.msra.mxu1 %v1645_v45 }
 0x167   :  { %1478 = vmatprep.subr.bf16.mxu0 %v1650_v44  ;;  %1500 = vmatprep.subr.bf16.mxu1 %v1648_v46 }
 0x16a   :  { %1501 = vmatpush3.bf16.msra.mxu1 %v1649_v47  ;;  %1479 = vmatpush3.bf16.msra.mxu0 %v1651_v48 }
 0x16b   :  { %1502 = vmatprep.subr.bf16.mxu1 %v1652_v49  ;;  %1480 = vmatprep.subr.bf16.mxu0 %v1654_v51 }
 0x16e   :  { %1503 = vmatpush3.bf16.msra.mxu1 %v1653_v50  ;;  %1481 = vmatpush3.bf16.msra.mxu0 %v1655_v52 }
 0x16f   :  { %1504 = vmatprep.subr.bf16.mxu1 %v1656_v53  ;;  %1482 = vmatprep.subr.bf16.mxu0 %v1658_v56 }
 0x172   :  { %1505 = vmatpush3.bf16.msra.mxu1 %v1657_v54  ;;  %1483 = vmatpush3.bf16.msra.mxu0 %v1659_v57 }
 0x228   :  { %v738_v0 = vpop.f32.mrb[12].mxu0  ;;  %v985_v7 = vpop.f32.mrb[12].mxu1 }
 0x229   :  { %v739_v2 = vadd.f32 %v738_v0, %v537_v61  ;;  %v740_v3 = vpop.f32.mrb[13].mxu0  ;;  %v986_v9 = vadd.f32 %v985_v7, %v784_v63  ;;  %v987_v11 = vpop.f32.mrb[13].mxu1 }
 0x22a   :  { %v741_v5 = vadd.f32 %v740_v3, %v541_v62  ;;  %v742_v6 = vpop.f32.mrb[14].mxu0  ;;  %v988_v13 = vadd.f32 %v987_v11, %v788_v1  ;;  %v989_v14 = vpop.f32.mrb[14].mxu1 }
 0x22b   :  { %v745_v8 = vmax.f32 %v739_v2, 0.0  ;;  %v743_v10 = vpop.f32.mrb[15].mxu0  ;;  %v992_v15 = vmax.f32 %v986_v9, 0.0  ;;  %v990_v16 = vpop.f32.mrb[15].mxu1 }
 0x22c   :  { %v746_v12 = vmax.f32 %v741_v5, 0.0  ;;  %v993_v17 = vmax.f32 %v988_v13, 0.0 }
 0x22d   :  { %v994_v55 = vpack.c.bf16 %v745_v8, %v745_v8  ;;  %v1028_v59 = vpack.c.bf16 %v992_v15, %v992_v15 }
 0x22e   :  { %v995_v4 = vpack.c.bf16 %v746_v12, %v746_v12  ;;  %v1029_v18 = vpack.c.bf16 %v993_v17, %v993_v17 }
 0x230   :  { %1326 = vmatprep.mubr.bf16.mxu1 %v995_v4  ;;  %1190 = vmatprep.mubr.bf16.mxu0 %v1029_v18 }
 0x231   :  { %1327 = vmatmul.mubr.bf16.vlgmr.msra.gmra.mrb[16].mxu1 %v994_v55  ;;  %1191 = vmatmul.mubr.bf16.vlgmr.msra.gmra.mrb[16].mxu0 %v1028_v59 }
 0x304   :  { %v1506_v19 = vpop.f32.mrb[16].mxu1  ;;  %v1484_v22 = vpop.f32.mrb[16].mxu0 }
 0x305   :  { %v1507_v20 = vpop.f32.mrb[17].mxu1  ;;  %v1485_v24 = vpop.f32.mrb[17].mxu0 }
 0x306   :  { %v1508_v21 = vadd.f32 %v1507_v20, %v1506_v19  ;;  %v1509_v23 = vpop.f32.mrb[18].mxu1  ;;  %v1486_v26 = vadd.f32 %v1485_v24, %v1484_v22  ;;  %v1487_v27 = vpop.f32.mrb[18].mxu0 }
 0x307   :  { %v1510_v25 = vpop.f32.mrb[19].mxu1  ;;  %v1488_v29 = vpop.f32.mrb[19].mxu0 }
 0x308   :  { %v1329_v30 = vadd.f32 %v1508_v21, %v1486_v26 }
 0x30a   :  { %v1341_v31 = vadd.f32 %v1467_v28, %v1329_v30 }
 0x30c   :  { %1343 = vst.msk [vmem:[%s2185_s14] sm:$0xff] %vm1342_vm6, %v1341_v31 }
 0x30d   :  { %1348 = vsyncpa [#allocation3], 1 }
 0x30e   :  { %1349 = vsyncpa [#allocation5], 1 }
 0x30f   :  { %1350 = vsyncpa [#allocation8], 1 }

</bundles_post_ra>
